<compile_context>
chip_gen: v7x
topology: tpu7x:2x2x1
jax: 0.10.0
libtpu: 0.0.40
codegen_flags: <defaults>
</compile_context>

<pallas_src>
import functools

import jax
import jax.numpy as jnp
from jax.experimental import pallas as pl
from jax.experimental.pallas import tpu as pltpu


def _round_up(x, m):
    return ((x + m - 1) // m) * m


def _triplet_tile_kernel(a_ref, p_ref, n_ref, o_ref, *,
                         margin, c, reduction, batch, tile_rows, needs_mask):
    pid = pl.program_id(0)

    a = a_ref[...].astype(jnp.float32)
    p = p_ref[...].astype(jnp.float32)
    n = n_ref[...].astype(jnp.float32)

    dp = a - p
    dn = a - n
    # Per-row L2 distances over the embedding dim (lanes) -> (TB, 1).
    dist_p = jnp.sqrt(jnp.sum(dp * dp, axis=1, keepdims=True))
    dist_n = jnp.sqrt(jnp.sum(dn * dn, axis=1, keepdims=True))

    losses = jnp.maximum(c * dist_p - dist_n + margin, 0.0)  # (TB, 1)

    if needs_mask:
        # Zero out padded rows of the (possibly ragged) last tile so they never
        # pollute the reduction (and never leak garbage into the output).
        row = jax.lax.broadcasted_iota(jnp.int32, (tile_rows, 1), 0)
        valid = row < (batch - pid * tile_rows)
        losses = jnp.where(valid, losses, 0.0)

    if reduction == "none":
        o_ref[...] = losses
    else:
        # Resident scalar accumulator: same (1,1) output block for every tile.
        @pl.when(pid == 0)
        def _init():
            o_ref[...] = jnp.zeros_like(o_ref)

        o_ref[...] = o_ref[...] + jnp.sum(losses)

        if reduction == "mean":
            @pl.when(pid == pl.num_programs(0) - 1)
            def _finalize():
                o_ref[...] = o_ref[...] * (1.0 / batch)


def altered_triplet_loss(anchor, positive, negative, *, margin, c=1.0, reduction="mean"):
    """Pallas implementation of AlteredTripletLoss.forward.

    anchor/positive/negative: (B, D) arrays (f32 or bf16).
    Returns a scalar (mean/sum) or a (B,) array (none), in float32.
    """
    if reduction not in ("none", "mean", "sum"):
        raise RuntimeError("reduce should be one of none, mean or sum")

    B, D = anchor.shape
    assert positive.shape == (B, D) and negative.shape == (B, D)

    itemsize = jnp.dtype(anchor.dtype).itemsize
    # Sublane packing: 8 rows for 4-byte dtypes, 16 for 2-byte, 32 for 1-byte.
    sublane = max(8, 32 // max(itemsize, 1))

    # Batch-tile size: largest tile whose double-buffered input footprint
    # (3 streams x 2 pipeline buffers) stays within ~24 MiB, capped at 1024 rows
    # (diminishing returns past ~85% of HBM roofline), rounded to a sublane
    # multiple, and never larger than the (sublane-rounded) batch itself.
    budget_bytes = 24 * 1024 * 1024
    bytes_per_row = 3 * 2 * D * itemsize
    tb = max(sublane, min(1024, budget_bytes // bytes_per_row))
    tb = (tb // sublane) * sublane
    tb = min(tb, _round_up(B, sublane))

    num_tiles = -(-B // tb)          # ceil-div
    padded_b = num_tiles * tb
    needs_mask = padded_b != B

    kernel = functools.partial(
        _triplet_tile_kernel,
        margin=float(margin), c=float(c), reduction=reduction,
        batch=B, tile_rows=tb, needs_mask=needs_mask)

    in_spec = pl.BlockSpec((tb, D), lambda i: (i, 0))

    if reduction == "none":
        out_shape = jax.ShapeDtypeStruct((padded_b, 1), jnp.float32)
        out_spec = pl.BlockSpec((tb, 1), lambda i: (i, 0))
        # Independent tiles -> shard across TensorCores on v7x (no-op on v5e/v6e).
        dim_sem = ("parallel",)
    else:
        out_shape = jax.ShapeDtypeStruct((1, 1), jnp.float32)
        out_spec = pl.BlockSpec((1, 1), lambda i: (0, 0))
        # Accumulator carried across the grid axis -> must be "arbitrary".
        dim_sem = ("arbitrary",)

    out = pl.pallas_call(
        kernel,
        grid=(num_tiles,),
        out_shape=out_shape,
        in_specs=[in_spec, in_spec, in_spec],
        out_specs=out_spec,
        compiler_params=pltpu.CompilerParams(
            dimension_semantics=dim_sem,
            vmem_limit_bytes=48 * 1024 * 1024),
    )(anchor, positive, negative)

    if reduction == "none":
        return out[:B, 0]  # (B,), matching torch's norm(dim=1) result shape
    return out[0, 0]       # scalar


if __name__ == "__main__":
    margin = 0.2
    c = 1.0
    key = jax.random.PRNGKey(0)

    def ref_loss(a, p, n, reduction):
        dp = jnp.linalg.norm(a - p, axis=1)
        dn = jnp.linalg.norm(a - n, axis=1)
        l = jnp.maximum(c * dp - dn + margin, 0.0)
        if reduction == "none":
            return l
        if reduction == "mean":
            return jnp.mean(l)
        return jnp.sum(l)

    # Small deterministic cases; (20, 32) exercises the ragged-tile mask path.
    for (B, D) in [(8, 32), (20, 32)]:
        ka, kp, kn = jax.random.split(jax.random.fold_in(key, B), 3)
        anchor = jax.random.normal(ka, (B, D), dtype=jnp.float32)
        positive = jax.random.normal(kp, (B, D), dtype=jnp.float32)
        negative = jax.random.normal(kn, (B, D), dtype=jnp.float32)

        for red in ("mean", "sum", "none"):
            got = altered_triplet_loss(
                anchor, positive, negative, margin=margin, c=c, reduction=red)
            got = jax.block_until_ready(got)
            want = ref_loss(anchor, positive, negative, red)
            assert jnp.allclose(got, want, atol=1e-5, rtol=1e-5), (B, D, red, got, want)

    print("KERNEL_OK")
</pallas_src>

<mosaic_0001>
module attributes {stable_mosaic.version = 11 : i64} {
  func.func @_triplet_tile_kernel(%arg0: i32, %arg1: memref<8x32xf32, #tpu.memory_space<vmem>>, %arg2: memref<8x32xf32, #tpu.memory_space<vmem>>, %arg3: memref<8x32xf32, #tpu.memory_space<vmem>>, %arg4: memref<1x1xf32, #tpu.memory_space<vmem>>) attributes {dimension_semantics = [#tpu.dimension_semantics<arbitrary>], iteration_bounds = array<i64: 1>, scalar_prefetch = 0 : i64, scratch_operands = 0 : i64, tpu.core_type = #tpu.core_type<tc>, window_params = [{transform_indices = @transform_0, window_bounds = array<i64: 8, 32>}, {transform_indices = @transform_1, window_bounds = array<i64: 8, 32>}, {transform_indices = @transform_2, window_bounds = array<i64: 8, 32>}, {pipeline_mode = #tpu.pipeline_mode<synchronous>, transform_indices = @transform_3, window_bounds = array<i64: 1, 1>}]} {
    %c0 = arith.constant 0 : index
    %c0_0 = arith.constant 0 : index
    %0 = vector.load %arg1[%c0, %c0_0] : memref<8x32xf32, #tpu.memory_space<vmem>>, vector<8x32xf32>
    %c0_1 = arith.constant 0 : index
    %c0_2 = arith.constant 0 : index
    %1 = vector.load %arg2[%c0_1, %c0_2] : memref<8x32xf32, #tpu.memory_space<vmem>>, vector<8x32xf32>
    %c0_3 = arith.constant 0 : index
    %c0_4 = arith.constant 0 : index
    %2 = vector.load %arg3[%c0_3, %c0_4] : memref<8x32xf32, #tpu.memory_space<vmem>>, vector<8x32xf32>
    %3 = arith.subf %0, %1 : vector<8x32xf32>
    %4 = arith.subf %0, %2 : vector<8x32xf32>
    %5 = arith.mulf %3, %3 : vector<8x32xf32>
    %cst = arith.constant dense<0.000000e+00> : vector<8xf32>
    %6 = vector.multi_reduction <add>, %5, %cst [1] : vector<8x32xf32> to vector<8xf32>
    %7 = vector.shape_cast %6 : vector<8xf32> to vector<8x1xf32>
    %8 = math.sqrt %7 : vector<8x1xf32>
    %9 = arith.mulf %4, %4 : vector<8x32xf32>
    %cst_5 = arith.constant dense<0.000000e+00> : vector<8xf32>
    %10 = vector.multi_reduction <add>, %9, %cst_5 [1] : vector<8x32xf32> to vector<8xf32>
    %11 = vector.shape_cast %10 : vector<8xf32> to vector<8x1xf32>
    %12 = math.sqrt %11 : vector<8x1xf32>
    %cst_6 = arith.constant 1.000000e+00 : f32
    %13 = vector.broadcast %cst_6 : f32 to vector<8x1xf32>
    %14 = arith.mulf %13, %8 : vector<8x1xf32>
    %15 = arith.subf %14, %12 : vector<8x1xf32>
    %cst_7 = arith.constant 2.000000e-01 : f32
    %16 = vector.broadcast %cst_7 : f32 to vector<8x1xf32>
    %17 = arith.addf %15, %16 : vector<8x1xf32>
    %cst_8 = arith.constant 0.000000e+00 : f32
    %18 = vector.broadcast %cst_8 : f32 to vector<8x1xf32>
    %19 = arith.maximumf %17, %18 : vector<8x1xf32>
    %c0_i32 = arith.constant 0 : i32
    %20 = arith.cmpi eq, %arg0, %c0_i32 : i32
    %21 = arith.extui %20 : i1 to i32
    %c0_i32_9 = arith.constant 0 : i32
    %22 = arith.cmpi ne, %21, %c0_i32_9 : i32
    scf.if %22 {
      %cst_17 = arith.constant 0.000000e+00 : f32
      %34 = vector.broadcast %cst_17 : f32 to vector<1x1xf32>
      %c0_18 = arith.constant 0 : index
      %c0_19 = arith.constant 0 : index
      %35 = vector.load %arg4[%c0_18, %c0_19] : memref<1x1xf32, #tpu.memory_space<vmem>>, vector<1x1xf32>
      tpu.vector_store %arg4[%c0_18, %c0_19], %34 {strides = array<i32>} : memref<1x1xf32, #tpu.memory_space<vmem>>, vector<1x1xf32>,
    } else {
    }
    %c0_10 = arith.constant 0 : index
    %c0_11 = arith.constant 0 : index
    %23 = vector.load %arg4[%c0_10, %c0_11] : memref<1x1xf32, #tpu.memory_space<vmem>>, vector<1x1xf32>
    %24 = vector.shape_cast %19 : vector<8x1xf32> to vector<1x8x1xf32>
    %cst_12 = arith.constant dense<0.000000e+00> : vector<1xf32>
    %25 = vector.multi_reduction <add>, %24, %cst_12 [1, 2] : vector<1x8x1xf32> to vector<1xf32>
    %26 = vector.shape_cast %25 : vector<1xf32> to vector<1x1x1xf32>
    %27 = vector.extract %26[0, 0, 0] : f32 from vector<1x1x1xf32>
    %28 = vector.broadcast %27 : f32 to vector<1x1xf32>
    %29 = arith.addf %23, %28 : vector<1x1xf32>
    %c0_13 = arith.constant 0 : index
    %c0_14 = arith.constant 0 : index
    %30 = vector.load %arg4[%c0_13, %c0_14] : memref<1x1xf32, #tpu.memory_space<vmem>>, vector<1x1xf32>
    tpu.vector_store %arg4[%c0_13, %c0_14], %29 {strides = array<i32>} : memref<1x1xf32, #tpu.memory_space<vmem>>, vector<1x1xf32>,
    %c0_i32_15 = arith.constant 0 : i32
    %31 = arith.cmpi eq, %arg0, %c0_i32_15 : i32
    %32 = arith.extui %31 : i1 to i32
    %c0_i32_16 = arith.constant 0 : i32
    %33 = arith.cmpi ne, %32, %c0_i32_16 : i32
    scf.if %33 {
      %c0_17 = arith.constant 0 : index
      %c0_18 = arith.constant 0 : index
      %34 = vector.load %arg4[%c0_17, %c0_18] : memref<1x1xf32, #tpu.memory_space<vmem>>, vector<1x1xf32>
      %cst_19 = arith.constant 1.250000e-01 : f32
      %35 = vector.broadcast %cst_19 : f32 to vector<1x1xf32>
      %36 = arith.mulf %34, %35 : vector<1x1xf32>
      %c0_20 = arith.constant 0 : index
      %c0_21 = arith.constant 0 : index
      %37 = vector.load %arg4[%c0_20, %c0_21] : memref<1x1xf32, #tpu.memory_space<vmem>>, vector<1x1xf32>
      tpu.vector_store %arg4[%c0_20, %c0_21], %36 {strides = array<i32>} : memref<1x1xf32, #tpu.memory_space<vmem>>, vector<1x1xf32>,
    } else {
    }
    return
  }
  func.func @transform_0(%arg0: i32) -> (i32, i32) {
    %c0_i32 = arith.constant 0 : i32
    %c0_i32_0 = arith.constant 0 : i32
    return %arg0, %c0_i32 : i32, i32
  }
  func.func @transform_1(%arg0: i32) -> (i32, i32) {
    %c0_i32 = arith.constant 0 : i32
    %c0_i32_0 = arith.constant 0 : i32
    return %arg0, %c0_i32 : i32, i32
  }
  func.func @transform_2(%arg0: i32) -> (i32, i32) {
    %c0_i32 = arith.constant 0 : i32
    %c0_i32_0 = arith.constant 0 : i32
    return %arg0, %c0_i32 : i32, i32
  }
  func.func @transform_3(%arg0: i32) -> (i32, i32) {
    %c0_i32 = arith.constant 0 : i32
    %c0_i32_0 = arith.constant 0 : i32
    %c0_i32_1 = arith.constant 0 : i32
    return %c0_i32, %c0_i32_0 : i32, i32
  }
}

</mosaic_0001>

<bundles_post_ra>
// kernel: tpu_custom_call.1
= control target key start
LH: loop header
LB: loop body
LE: loop exit
PB: predicated region body
PF: predicated region fallthrough
CT: control target
= control target key end

     0   :  { %8 = vsyncpa [#allocation3], 0  ;;  %s306_s0 = inlined_call_operand.hbm [shape: f32[8,32], index: 0, kind: input, shape index: {}]   ;;  %s307_s1 = inlined_call_operand.hbm [shape: f32[8,32], index: 1, kind: input, shape index: {}]   ;;  %s308_s2 = inlined_call_operand.hbm [shape: f32[8,32], index: 2, kind: input, shape index: {}]   ;;  %s309_s3 = inlined_call_operand.hbm [shape: f32[1,1], index: 3, kind: output, shape index: {}]  }
   0x1   :  { %9 = vsyncpa [#allocation6], 0 }
   0x2   :  { %10 = vsyncpa [#allocation4], 0  ;;  %s230_s12 = smov [#allocation5]   ;;  %s231_s14 = smov [#allocation2]  }
   0x3   :  { %s27_s13 = sshll.u32 %s230_s12, 4  ;;  %s17_s15 = sshll.u32 %s231_s14, 4  ;;  %s28_s13 = int_to_ptr.vmem [resolvable:$true] %s27_s13  ;;  %s18_s15 = int_to_ptr.vmem [resolvable:$true] %s17_s15 }
   0x4   :  { %s136_s18 = scalar_lea.hbm %s307_s1, 128 }
   0x5   :  { %p137_p0 = scmp.ne.s32.totalorder %s307_s1, %s136_s18  ;;  %p140_p1 = scmp.lt.u32.totalorder %s136_s18, %s307_s1 }
   0x7   :  { %p142_p2 = pnand %p140_p1, %p137_p0 }
   0x9   :  { %145 = shalt.err (!%p142_p2)
}
   0xa   :  { %s146_s23 = scalar_lea.vmem %s28_s13, 128  ;;  %p151_p4 = scmp.lt.s32.totalorder %s28_s13, %s28_s13 }
   0xb   :  { %p147_p3 = scmp.ne.s32.totalorder %s28_s13, %s146_s23  ;;  %p152_p5 = scmp.lt.s32.totalorder %s146_s23, %s146_s23 }
   0xd   :  { %p153_p6 = por %p152_p5, %p151_p4 }
   0xf   :  { %p154_p7 = pnand %p153_p6, %p147_p3 }
  0x11   :  { %157 = shalt.err (!%p154_p7)
}
  0x12   :  { %30 = dma.hbm_to_vmem [thread:$0]  %s307_s1, 128, %s28_s13, [#allocation6]  }
  0x13   :  { %s158_s28 = scalar_lea.hbm %s306_s0, 128 }
  0x14   :  { %p159_p8 = scmp.ne.s32.totalorder %s306_s0, %s158_s28  ;;  %p162_p9 = scmp.lt.u32.totalorder %s158_s28, %s306_s0 }
  0x16   :  { %p164_p10 = pnand %p162_p9, %p159_p8 }
  0x18   :  { %167 = shalt.err (!%p164_p10)
}
  0x19   :  { %s168_s6 = scalar_lea.vmem %s18_s15, 128  ;;  %p173_p12 = scmp.lt.s32.totalorder %s18_s15, %s18_s15 }
  0x1a   :  { %p169_p11 = scmp.ne.s32.totalorder %s18_s15, %s168_s6  ;;  %p174_p13 = scmp.lt.s32.totalorder %s168_s6, %s168_s6 }
  0x1c   :  { %p175_p0 = por %p174_p13, %p173_p12 }
  0x1e   :  { %p176_p1 = pnand %p175_p0, %p169_p11 }
  0x20   :  { %179 = shalt.err (!%p176_p1)
}
  0x21   :  { %20 = dma.hbm_to_vmem [thread:$0]  %s306_s0, 128, %s18_s15, [#allocation3]  }
  0x22   :  { %s232_s8 = smov [#allocation7]   ;;  %s180_s12 = scalar_lea.hbm %s308_s2, 128 }
  0x23   :  { %s37_s9 = sshll.u32 %s232_s8, 4  ;;  %p181_p2 = scmp.ne.s32.totalorder %s308_s2, %s180_s12  ;;  %s38_s9 = int_to_ptr.vmem [resolvable:$true] %s37_s9 }
  0x24   :  { %p184_p3 = scmp.lt.u32.totalorder %s180_s12, %s308_s2 }
  0x26   :  { %p186_p4 = pnand %p184_p3, %p181_p2 }
  0x28   :  { %189 = shalt.err (!%p186_p4)
}
  0x29   :  { %s190_s18 = scalar_lea.vmem %s38_s9, 128  ;;  %p195_p6 = scmp.lt.s32.totalorder %s38_s9, %s38_s9 }
  0x2a   :  { %p191_p5 = scmp.ne.s32.totalorder %s38_s9, %s190_s18  ;;  %p196_p7 = scmp.lt.s32.totalorder %s190_s18, %s190_s18 }
  0x2c   :  { %p197_p8 = por %p196_p7, %p195_p6 }
  0x2e   :  { %p198_p9 = pnand %p197_p8, %p191_p5 }
  0x30   :  { %201 = shalt.err (!%p198_p9)
}
  0x31   :  { %40 = dma.hbm_to_vmem [thread:$0]  %s308_s2, 128, %s38_s9, [#allocation6]  }
  0x32   :  { %224 = dma.done.wait [#allocation3], 128  }
  0x33   :  { %225 = vsyncadd [#allocation3], 4294967168 }
  0x34   :  { %226 = dma.done.wait [#allocation6], 256  }
  0x35   :  { %227 = vsyncadd [#allocation6], 4294967040  ;;  %v50_v0 = vld [vmem:[#allocation2] sm:$0xff]  ;;  %v51_v1 = vld [vmem:[#allocation5] sm:$0xff]  ;;  %vm56_vm0 = vcmask 261120   ;;  %vm88_vm5 = vcmask 7168  }
  0x36   :  { %v52_v2 = vld [vmem:[#allocation7] sm:$0xff]  ;;  %v53_v3 = vsub.f32 %v50_v0, %v51_v1  ;;  %vm85_vm6 = vcmask 0   ;;  %v233_v25 = vmov 0.0   ;;  %s234_s19 = smov [#allocation8]  }
  0x37   :  { %v54_v4 = vsub.f32 %v50_v0, %v52_v2  ;;  %86 = vst.msk [vmem:[#allocation8] sm:$0x1] %vm85_vm6, %v233_v25  ;;  %s115_s20 = sshll.u32 %s234_s19, 4  ;;  %s116_s20 = int_to_ptr.vmem [resolvable:$true] %s115_s20 }
  0x38   :  { %v55_v5 = vmul.f32 %v53_v3, %v53_v3  ;;  %s202_s21 = scalar_lea.vmem %s116_s20, 16  ;;  %s206_s22 = scalar_lea.vmem %s116_s20, 32 }
  0x39   :  { %v67_v6 = vmul.f32 %v54_v4, %v54_v4  ;;  %p203_p10 = scmp.ne.s32.totalorder %s116_s20, %s202_s21  ;;  %p207_p11 = scmp.lt.s32.totalorder %s116_s20, %s116_s20 }
  0x3a   :  { %v57_v7 = vsel %vm56_vm0, %v55_v5, 0.0  ;;  %p208_p12 = scmp.lt.s32.totalorder %s206_s22, %s202_s21 }
  0x3b   :  { %58 = vadd.xlane.f32.xlu0 %v57_v7  ;;  %v68_v8 = vsel %vm56_vm0, %v67_v6, 0.0 }
  0x3c   :  { %p209_p13 = por %p208_p12, %p207_p11 }
  0x3e   :  { %v87_v33 = vld [vmem:[#allocation8] sm:$0x1]  ;;  %p210_p0 = pnand %p209_p13, %p203_p10 }
  0x3f   :  { %69 = vadd.xlane.f32.xlu0 %v68_v8 }
  0xc8   :  { %v59_v9 = vpop.xlane.xlu0 %58 }
  0xc9   :  { %132 = vrsqrt.f32 %v59_v9  ;;  %vm62_vm1 = vcmp.eq.f32.partialorder %v59_v9, inf  ;;  %v65_v16 = vand.u32 2147483648, %v59_v9  ;;  %vm64_vm3 = vcmp.eq.f32.partialorder %v59_v9, 0.0 }
  0xcc   :  { %v70_v10 = vpop.xlane.xlu0 %69 }
  0xcd   :  { %134 = vrsqrt.f32 %v70_v10  ;;  %vm73_vm2 = vcmp.eq.f32.partialorder %v70_v10, inf  ;;  %v76_v17 = vand.u32 2147483648, %v70_v10  ;;  %vm75_vm4 = vcmp.eq.f32.partialorder %v70_v10, 0.0 }
  0xd3   :  { %v133_v11 = vpop.eup %132 }
  0xd4   :  { %v61_v12 = vmul.f32 %v133_v11, %v59_v9 }
  0xd6   :  { %v63_v15 = vsel %vm62_vm1, %v59_v9, %v61_v12 }
  0xd7   :  { %v135_v13 = vpop.eup %134  ;;  %v66_v19 = vsel %vm64_vm3, %v65_v16, %v63_v15 }
  0xd8   :  { %v72_v14 = vmul.f32 %v135_v13, %v70_v10 }
  0xda   :  { %v74_v18 = vsel %vm73_vm2, %v70_v10, %v72_v14 }
  0xdb   :  { %v77_v20 = vsel %vm75_vm4, %v76_v17, %v74_v18 }
  0xdc   :  { %v78_v21 = vsub.f32 %v66_v19, %v77_v20 }
  0xde   :  { %v79_v22 = vadd.f32 0.2, %v78_v21 }
  0xe0   :  { %v80_v23 = vmax.f32 %v79_v22, 0.0 }
  0xe2   :  { %v89_v24 = vsel %vm88_vm5, %v80_v23, 0.0 }
  0xe3   :  { %90 = vadd.xlane.f32.xlu1 %v89_v24 }
 0x170   :  { %v91_v26 = vpop.xlane.xlu1 %90 }
 0x171   :  { %v92_v27 = vrot.slane %v91_v26, 4 }
 0x173   :  { %v93_v28 = vadd.f32 %v92_v27, %v91_v26 }
 0x175   :  { %v94_v29 = vrot.slane %v93_v28, 2 }
 0x177   :  { %v95_v30 = vadd.f32 %v94_v29, %v93_v28 }
 0x179   :  { %v96_v31 = vrot.slane %v95_v30, 1 }
 0x17b   :  { %v97_v32 = vadd.f32 %v96_v31, %v95_v30 }
 0x17d   :  { %125 = vpush %v97_v32 }
 0x1ae   :  { %s126_s2 = spop %125 }
 0x1af   :  { %v99_v34 = vstv %s126_s2 }
 0x1b0   :  { %v100_v35 = vadd.f32 %v99_v34, %v87_v33 }
 0x1b2   :  { %102 = vst.msk [vmem:[#allocation8] sm:$0x1] %vm85_vm6, %v100_v35 }
 0x1b9   :  { %v106_v36 = vld [vmem:[#allocation8] sm:$0x1] }
 0x1ba   :  { %v107_v37 = vmul.f32 0.125, %v106_v36 }
 0x1bc   :  { %108 = vst.msk [vmem:[#allocation8] sm:$0x1] %vm85_vm6, %v107_v37 }
 0x1bd   :  { %213 = shalt.err (!%p210_p0)
}
 0x1be   :  { %s214_s25 = scalar_lea.hbm %s309_s3, 16 }
 0x1bf   :  { %p215_p1 = scmp.ne.s32.totalorder %s309_s3, %s214_s25  ;;  %p218_p2 = scmp.lt.u32.totalorder %s214_s25, %s309_s3 }
 0x1c1   :  { %p220_p3 = pnand %p218_p2, %p215_p1 }
 0x1c3   :  { %223 = shalt.err (!%p220_p3)
}
 0x1c4   :  { %118 = dma.vmem_to_hbm [thread:$0]  %s116_s20, 16, %s309_s3, [#allocation4]  }
 0x1c5   :  { %228 = dma.done.wait [#allocation4], 16  }
 0x1c6   :  { %229 = vsyncadd [#allocation4], 4294967280 }
 0x1c7   :  { %122 = vsyncpa [#allocation3], 1 }
 0x1c8   :  { %123 = vsyncpa [#allocation6], 1 }
 0x1c9   :  { %124 = vsyncpa [#allocation4], 1 }

</bundles_post_ra>
